<compile_context>
chip_gen: v5e
topology: v5e:2x2
jax: 0.10.0
libtpu: 0.0.40
codegen_flags: <defaults>
</compile_context>

<pallas_src>
import functools
import math

import jax
import jax.numpy as jnp
from jax.experimental import pallas as pl
from jax.experimental.pallas import tpu as pltpu


def _mha_kernel(q_ref, k_ref, v_ref, mask_ref, w_ref, b_ref, *rest,
                n_heads, d_k, return_attn):
    """One (batch, query-tile) grid step.

    q_ref    : (1, Tq, D)  input dtype (f32 or bf16)
    k_ref    : (1, L,  D)  input dtype — DMA'd once per batch (block invariant
                           across the query-tile axis)
    v_ref    : (1, L,  D)  input dtype
    mask_ref : (1, Tq, L)  any dtype; entries == 0 are masked out
    w_ref    : (4, D, D)   bf16, pre-transposed so y = x @ w_ref[i]; w_ref[0]
                           (and b_ref[0]) already carry the 1/sqrt(d_k) scale
    b_ref    : (4, D)      f32
    out_ref  : (1, Tq, D)  f32
    attn_ref : (1, Tq, L)  f32 (optional) — mean over heads of attn probs
    kt_sc    : (D, L)      bf16 VMEM cache of projected keys, transposed
    vp_sc    : (L, D)      bf16 VMEM cache of projected values
    """
    if return_attn:
        out_ref, attn_ref, kt_sc, vp_sc = rest
    else:
        out_ref, kt_sc, vp_sc = rest
        attn_ref = None

    # ---- once per batch: project K/V and cache across all query tiles -------
    @pl.when(pl.program_id(1) == 0)
    def _():
        k_in = k_ref[0].astype(jnp.bfloat16)                        # (L, D)
        v_in = v_ref[0].astype(jnp.bfloat16)                        # (L, D)
        kp = jnp.dot(k_in, w_ref[1],
                     preferred_element_type=jnp.float32) + b_ref[1]  # (L, D)
        vp = jnp.dot(v_in, w_ref[2],
                     preferred_element_type=jnp.float32) + b_ref[2]  # (L, D)
        # Single f32 transpose per batch (XLU); every head then does a plain
        # (Tq, d_k) x (d_k, L) matmul with no per-head relayout/transpose.
        kt_sc[...] = kp.T.astype(jnp.bfloat16)                       # (D, L)
        vp_sc[...] = vp.astype(jnp.bfloat16)                         # (L, D)

    # ---- per query tile ------------------------------------------------------
    q_in = q_ref[0].astype(jnp.bfloat16)                             # (Tq, D)
    # 1/sqrt(d_k) is folded into w_ref[0] / b_ref[0] by the wrapper.
    qp = jnp.dot(q_in, w_ref[0],
                 preferred_element_type=jnp.float32) + b_ref[0]      # (Tq, D)
    qp_b = qp.astype(jnp.bfloat16)

    # Additive mask bias hoisted out of the head loop (single cmp+select).
    mask_bias = jnp.where(mask_ref[0] == 0, -1.0e9, 0.0).astype(jnp.float32)

    woT = w_ref[3]                                                   # (D, D)
    single_proj = (d_k % 128 == 0)

    ctx_parts = []
    out_acc = None
    attn_sum = None

    # Static loop over heads (n_heads is a small compile-time constant).
    for hh in range(n_heads):
        lo = hh * d_k
        q_h = qp_b[:, lo:lo + d_k]                  # (Tq, d_k) bf16
        k_h = kt_sc[lo:lo + d_k, :]                 # (d_k, L)  bf16 (cached)
        v_h = vp_sc[:, lo:lo + d_k]                 # (L, d_k)  bf16 (cached)

        # Scores (scale already in qp): plain MXU matmul, f32 accumulation.
        s = jnp.dot(q_h, k_h, preferred_element_type=jnp.float32) + mask_bias

        # Online-free softmax along keys in f32; the normalization is applied
        # to the narrow (Tq, d_k) context instead of the wide (Tq, L) tile.
        m = jnp.max(s, axis=-1, keepdims=True)
        e = jnp.exp(s - m)                                           # (Tq, L)
        denom = jnp.sum(e, axis=-1, keepdims=True)
        inv = pl.reciprocal(denom, approx=True)                      # EUP

        ctx = jnp.dot(e.astype(jnp.bfloat16), v_h,
                      preferred_element_type=jnp.float32) * inv      # (Tq, d_k)

        if attn_ref is not None:
            p = e * inv
            attn_sum = p if attn_sum is None else attn_sum + p

        if single_proj:
            ctx_parts.append(ctx.astype(jnp.bfloat16))
        else:
            contrib = jnp.dot(ctx.astype(jnp.bfloat16), woT[lo:lo + d_k, :],
                              preferred_element_type=jnp.float32)
            out_acc = contrib if out_acc is None else out_acc + contrib

    if single_proj:
        # Lane-aligned concat (d_k % 128 == 0) + one full-depth output matmul.
        ctx_all = jnp.concatenate(ctx_parts, axis=-1)                # (Tq, D)
        out_acc = jnp.dot(ctx_all, woT, preferred_element_type=jnp.float32)

    out_ref[0] = (out_acc + b_ref[3]).astype(out_ref.dtype)
    if attn_ref is not None:
        attn_ref[0] = (attn_sum * (1.0 / n_heads)).astype(attn_ref.dtype)


def _vmem_capacity_bytes():
    """Physical VMEM of the local chip; conservative 64 MiB fallback (v7x)."""
    try:
        cap = getattr(pltpu.get_tpu_info(), "vmem_capacity_bytes", None)
        if cap:
            return int(cap)
    except Exception:
        pass
    return 64 * 1024 * 1024


def multi_headed_attention(query, key, value, mask, W, b, *, n_heads,
                           return_attn=True):
    """Pallas-backed forward of MultiHeadedAttention (eval mode).

    query/key/value : (B, L, d_model); f32 or bf16 (cast to bf16 in-kernel)
    mask            : (B, L, L); entries equal to 0 are masked out
    W               : (4, d_model, d_model) stacked [Wq, Wk, Wv, Wo] in the
                      nn.Linear (out, in) layout;  b: (4, d_model)
    Returns (out (B, L, d_model) f32, attn_mean (B, L, L) f32); attn_mean is
    None when return_attn=False (skips the B*L*L HBM writeback entirely).
    """
    B, L, D = query.shape
    assert D % n_heads == 0
    d_k = D // n_heads

    # One-time wrapper prep (cheap, no extra passes over activations):
    #  * transpose nn.Linear weights so the kernel does x @ W^T directly,
    #  * fold the 1/sqrt(d_k) score scale into Wq / bq (free at runtime),
    #  * cast weights to bf16 for the MXU (f32 accumulation in-kernel).
    scale = 1.0 / math.sqrt(d_k)
    W_t = jnp.swapaxes(W, 1, 2).astype(jnp.float32)
    W_t = W_t.at[0].multiply(scale).astype(jnp.bfloat16)             # (4, D, D)
    b_f32 = b.astype(jnp.float32).at[0].multiply(scale)              # (4, D)

    # ---- generation-aware VMEM plan -----------------------------------------
    vmem_cap = _vmem_capacity_bytes()
    budget = int(0.85 * vmem_cap)          # leave compiler-scratch headroom
    in_bytes = jnp.dtype(query.dtype).itemsize
    mask_bytes = jnp.dtype(mask.dtype).itemsize

    def est_bytes(tq):
        e = 2 * tq * D * in_bytes                      # q tile (dbl-buffered)
        e += 2 * 2 * L * D * in_bytes                  # full K, V blocks
        e += 2 * tq * L * mask_bytes                   # mask tile
        e += 2 * (4 * D * D * 2 + 4 * D * 4)           # weights bf16 + bias f32
        e += 2 * tq * D * 4                            # output tile
        if return_attn:
            e += 2 * tq * L * 4                        # attention tile
        e += 2 * L * D * 2                             # kt / vp bf16 caches
        e += 3 * L * D * 4                             # per-batch proj temps
        e += 5 * tq * L * 4 + 6 * tq * D * 4           # head-loop f32 temps
        return e

    # Bigger query tiles on 128 MiB chips (v5e/v6e); smaller on v7x (64 MiB).
    cands = [1024, 512, 256, 128] if vmem_cap >= 100 * 1024 * 1024 else [256, 128]
    cands = [t for t in cands if L % t == 0] or [L]
    tq = next((t for t in cands if est_bytes(t) <= budget), cands[-1])
    n_qt = L // tq
    vmem_limit = min(budget, max(32 * 1024 * 1024, int(1.25 * est_bytes(tq))))

    kernel = functools.partial(_mha_kernel, n_heads=n_heads, d_k=d_k,
                               return_attn=return_attn)

    in_specs = [
        pl.BlockSpec((1, tq, D), lambda bi, qi: (bi, qi, 0)),   # query tile
        pl.BlockSpec((1, L, D), lambda bi, qi: (bi, 0, 0)),     # keys (per batch)
        pl.BlockSpec((1, L, D), lambda bi, qi: (bi, 0, 0)),     # values (per batch)
        pl.BlockSpec((1, tq, L), lambda bi, qi: (bi, qi, 0)),   # mask rows
        pl.BlockSpec((4, D, D), lambda bi, qi: (0, 0, 0)),      # weights (invariant)
        pl.BlockSpec((4, D), lambda bi, qi: (0, 0)),            # biases (invariant)
    ]
    out_specs = [pl.BlockSpec((1, tq, D), lambda bi, qi: (bi, qi, 0))]
    out_shapes = [jax.ShapeDtypeStruct((B, L, D), jnp.float32)]
    if return_attn:
        out_specs.append(pl.BlockSpec((1, tq, L), lambda bi, qi: (bi, qi, 0)))
        out_shapes.append(jax.ShapeDtypeStruct((B, L, L), jnp.float32))

    grid_spec = pltpu.PrefetchScalarGridSpec(
        num_scalar_prefetch=0,
        grid=(B, n_qt),                        # qi innermost (sequential)
        in_specs=in_specs,
        out_specs=out_specs,
        scratch_shapes=[
            pltpu.VMEM((D, L), jnp.bfloat16),  # projected keys, transposed
            pltpu.VMEM((L, D), jnp.bfloat16),  # projected values
        ],
    )

    outs = pl.pallas_call(
        kernel,
        out_shape=tuple(out_shapes),
        grid_spec=grid_spec,
        compiler_params=pltpu.CompilerParams(
            # batch "parallel" (megacore / dual-TC), query-tile "arbitrary"
            # so the per-batch K/V projection cache stays coherent.
            dimension_semantics=("parallel", "arbitrary"),
            vmem_limit_bytes=vmem_limit),
    )(query, key, value, mask, W_t, b_f32)

    if return_attn:
        return outs[0], outs[1]
    return outs[0], None


def _reference_mha(query, key, value, mask, W, b, n_heads):
    """Pure-JAX f32 reference mirroring the PyTorch module (eval mode)."""
    B, L, D = query.shape
    d_k = D // n_heads

    def lin(x, w, bias):
        return jnp.einsum('bld,od->blo', x, w) + bias

    q = lin(query, W[0], b[0]).reshape(B, L, n_heads, d_k).transpose(0, 2, 1, 3)
    k = lin(key,   W[1], b[1]).reshape(B, L, n_heads, d_k).transpose(0, 2, 1, 3)
    v = lin(value, W[2], b[2]).reshape(B, L, n_heads, d_k).transpose(0, 2, 1, 3)

    scores = jnp.einsum('bhqd,bhkd->bhqk', q, k) / math.sqrt(d_k)
    scores = jnp.where(mask[:, None, :, :] == 0, -1000000000.0, scores)
    p = jax.nn.softmax(scores, axis=-1)
    x = jnp.einsum('bhqk,bhkd->bhqd', p, v)
    x = x.transpose(0, 2, 1, 3).reshape(B, L, D)
    out = lin(x, W[3], b[3])
    return out, jnp.mean(p, axis=1)


if __name__ == "__main__":
    # Small shapes consistent with the module.
    B, L, d_model, n_heads = 2, 8, 32, 4

    key0 = jax.random.PRNGKey(0)
    kq, kk, kv, kw, kb, km = jax.random.split(key0, 6)

    query = jax.random.normal(kq, (B, L, d_model), dtype=jnp.float32)
    key_in = jax.random.normal(kk, (B, L, d_model), dtype=jnp.float32)
    value = jax.random.normal(kv, (B, L, d_model), dtype=jnp.float32)

    # Deterministic parameter init (roughly nn.Linear default scale).
    bound = 1.0 / math.sqrt(d_model)
    W = jax.random.uniform(kw, (4, d_model, d_model),
                           minval=-bound, maxval=bound, dtype=jnp.float32)
    b = jax.random.uniform(kb, (4, d_model),
                           minval=-bound, maxval=bound, dtype=jnp.float32)

    # Binary mask (1 = attend, 0 = masked); make sure no row is fully masked.
    mask = (jax.random.uniform(km, (B, L, L)) > 0.2).astype(jnp.float32)
    mask = mask.at[:, :, 0].set(1.0)

    out, attn_mean = multi_headed_attention(
        query, key_in, value, mask, W, b, n_heads=n_heads)
    out = jax.block_until_ready(out)
    attn_mean = jax.block_until_ready(attn_mean)

    ref_out, ref_attn = _reference_mha(query, key_in, value, mask, W, b, n_heads)

    # Tolerances account for bf16 MXU inputs (f32 accumulation) and the EUP
    # approximate-reciprocal softmax normalization.
    assert jnp.allclose(out, ref_out, atol=5e-2, rtol=5e-2), "output mismatch"
    assert jnp.allclose(attn_mean, ref_attn, atol=1e-2, rtol=5e-2), "attn mismatch"

    print("KERNEL_OK")
</pallas_src>

<mosaic_0001>
module attributes {stable_mosaic.version = 11 : i64} {
  func.func @_mha_kernel(%arg0: i32, %arg1: i32, %arg2: memref<1x8x32xf32, #tpu.memory_space<vmem>>, %arg3: memref<1x8x32xf32, #tpu.memory_space<vmem>>, %arg4: memref<1x8x32xf32, #tpu.memory_space<vmem>>, %arg5: memref<1x8x8xf32, #tpu.memory_space<vmem>>, %arg6: memref<4x32x32xbf16, #tpu.memory_space<vmem>>, %arg7: memref<4x32xf32, #tpu.memory_space<vmem>>, %arg8: memref<1x8x32xf32, #tpu.memory_space<vmem>>, %arg9: memref<1x8x8xf32, #tpu.memory_space<vmem>>, %arg10: memref<32x8xbf16, #tpu.memory_space<vmem>>, %arg11: memref<8x32xbf16, #tpu.memory_space<vmem>>) attributes {dimension_semantics = [#tpu.dimension_semantics<parallel>, #tpu.dimension_semantics<arbitrary>], iteration_bounds = array<i64: 2, 1>, scalar_prefetch = 0 : i64, scratch_operands = 2 : i64, tpu.core_type = #tpu.core_type<tc>, window_params = [{transform_indices = @transform_0, window_bounds = array<i64: 1, 8, 32>}, {transform_indices = @transform_1, window_bounds = array<i64: 1, 8, 32>}, {transform_indices = @transform_2, window_bounds = array<i64: 1, 8, 32>}, {transform_indices = @transform_3, window_bounds = array<i64: 1, 8, 8>}, {pipeline_mode = #tpu.pipeline_mode<synchronous>, transform_indices = @transform_4, window_bounds = array<i64: 4, 32, 32>}, {pipeline_mode = #tpu.pipeline_mode<synchronous>, transform_indices = @transform_5, window_bounds = array<i64: 4, 32>}, {transform_indices = @transform_6, window_bounds = array<i64: 1, 8, 32>}, {transform_indices = @transform_7, window_bounds = array<i64: 1, 8, 8>}]} {
    %c0_i32 = arith.constant 0 : i32
    %0 = arith.cmpi eq, %arg1, %c0_i32 : i32
    %1 = arith.extui %0 : i1 to i32
    %c0_i32_0 = arith.constant 0 : i32
    %2 = arith.cmpi ne, %1, %c0_i32_0 : i32
    scf.if %2 {
      %c0_58 = arith.constant 0 : index
      %c0_59 = arith.constant 0 : index
      %c0_60 = arith.constant 0 : index
      %131 = vector.load %arg3[%c0_58, %c0_59, %c0_60] : memref<1x8x32xf32, #tpu.memory_space<vmem>>, vector<1x8x32xf32>
      %132 = vector.shape_cast %131 : vector<1x8x32xf32> to vector<8x32xf32>
      %133 = arith.truncf %132 : vector<8x32xf32> to vector<8x32xbf16>
      %c0_61 = arith.constant 0 : index
      %c0_62 = arith.constant 0 : index
      %c0_63 = arith.constant 0 : index
      %134 = vector.load %arg4[%c0_61, %c0_62, %c0_63] : memref<1x8x32xf32, #tpu.memory_space<vmem>>, vector<1x8x32xf32>
      %135 = vector.shape_cast %134 : vector<1x8x32xf32> to vector<8x32xf32>
      %136 = arith.truncf %135 : vector<8x32xf32> to vector<8x32xbf16>
      %c1 = arith.constant 1 : index
      %c0_64 = arith.constant 0 : index
      %c0_65 = arith.constant 0 : index
      %137 = vector.load %arg6[%c1, %c0_64, %c0_65] : memref<4x32x32xbf16, #tpu.memory_space<vmem>>, vector<1x32x32xbf16>
      %138 = vector.shape_cast %137 : vector<1x32x32xbf16> to vector<32x32xbf16>
      %cst_66 = arith.constant dense<0.000000e+00> : vector<8x32xf32>
      %139 = tpu.matmul %133, %138, %cst_66 {dimension_numbers = #tpu.dot_dimension_numbers<[1], [0], [0], [1], [0, 0, 1, 1], [], []>} : vector<8x32xbf16>, vector<32x32xbf16>, vector<8x32xf32> -> vector<8x32xf32>
      %c1_67 = arith.constant 1 : index
      %c0_68 = arith.constant 0 : index
      %140 = vector.load %arg7[%c1_67, %c0_68] : memref<4x32xf32, #tpu.memory_space<vmem>>, vector<1x32xf32>
      %141 = vector.shape_cast %140 : vector<1x32xf32> to vector<32xf32>
      %142 = vector.shape_cast %141 : vector<32xf32> to vector<1x32xf32>
      %143 = vector.broadcast %142 : vector<1x32xf32> to vector<8x32xf32>
      %144 = arith.addf %139, %143 : vector<8x32xf32>
      %c2 = arith.constant 2 : index
      %c0_69 = arith.constant 0 : index
      %c0_70 = arith.constant 0 : index
      %145 = vector.load %arg6[%c2, %c0_69, %c0_70] : memref<4x32x32xbf16, #tpu.memory_space<vmem>>, vector<1x32x32xbf16>
      %146 = vector.shape_cast %145 : vector<1x32x32xbf16> to vector<32x32xbf16>
      %cst_71 = arith.constant dense<0.000000e+00> : vector<8x32xf32>
      %147 = tpu.matmul %136, %146, %cst_71 {dimension_numbers = #tpu.dot_dimension_numbers<[1], [0], [0], [1], [0, 0, 1, 1], [], []>} : vector<8x32xbf16>, vector<32x32xbf16>, vector<8x32xf32> -> vector<8x32xf32>
      %c2_72 = arith.constant 2 : index
      %c0_73 = arith.constant 0 : index
      %148 = vector.load %arg7[%c2_72, %c0_73] : memref<4x32xf32, #tpu.memory_space<vmem>>, vector<1x32xf32>
      %149 = vector.shape_cast %148 : vector<1x32xf32> to vector<32xf32>
      %150 = vector.shape_cast %149 : vector<32xf32> to vector<1x32xf32>
      %151 = vector.broadcast %150 : vector<1x32xf32> to vector<8x32xf32>
      %152 = arith.addf %147, %151 : vector<8x32xf32>
      %153 = tpu.transpose %144, [1, 0] : vector<8x32xf32> -> vector<32x8xf32>
      %154 = arith.truncf %153 : vector<32x8xf32> to vector<32x8xbf16>
      %c0_74 = arith.constant 0 : index
      %c0_75 = arith.constant 0 : index
      %155 = vector.load %arg10[%c0_74, %c0_75] : memref<32x8xbf16, #tpu.memory_space<vmem>>, vector<32x8xbf16>
      tpu.vector_store %arg10[%c0_74, %c0_75], %154 {strides = array<i32>} : memref<32x8xbf16, #tpu.memory_space<vmem>>, vector<32x8xbf16>,
      %156 = arith.truncf %152 : vector<8x32xf32> to vector<8x32xbf16>
      %c0_76 = arith.constant 0 : index
      %c0_77 = arith.constant 0 : index
      %157 = vector.load %arg11[%c0_76, %c0_77] : memref<8x32xbf16, #tpu.memory_space<vmem>>, vector<8x32xbf16>
      tpu.vector_store %arg11[%c0_76, %c0_77], %156 {strides = array<i32>} : memref<8x32xbf16, #tpu.memory_space<vmem>>, vector<8x32xbf16>,
    } else {
    }
    %c0 = arith.constant 0 : index
    %c0_1 = arith.constant 0 : index
    %c0_2 = arith.constant 0 : index
    %3 = vector.load %arg2[%c0, %c0_1, %c0_2] : memref<1x8x32xf32, #tpu.memory_space<vmem>>, vector<1x8x32xf32>
    %4 = vector.shape_cast %3 : vector<1x8x32xf32> to vector<8x32xf32>
    %5 = arith.truncf %4 : vector<8x32xf32> to vector<8x32xbf16>
    %c0_3 = arith.constant 0 : index
    %c0_4 = arith.constant 0 : index
    %c0_5 = arith.constant 0 : index
    %6 = vector.load %arg6[%c0_3, %c0_4, %c0_5] : memref<4x32x32xbf16, #tpu.memory_space<vmem>>, vector<1x32x32xbf16>
    %7 = vector.shape_cast %6 : vector<1x32x32xbf16> to vector<32x32xbf16>
    %cst = arith.constant dense<0.000000e+00> : vector<8x32xf32>
    %8 = tpu.matmul %5, %7, %cst {dimension_numbers = #tpu.dot_dimension_numbers<[1], [0], [0], [1], [0, 0, 1, 1], [], []>} : vector<8x32xbf16>, vector<32x32xbf16>, vector<8x32xf32> -> vector<8x32xf32>
    %c0_6 = arith.constant 0 : index
    %c0_7 = arith.constant 0 : index
    %9 = vector.load %arg7[%c0_6, %c0_7] : memref<4x32xf32, #tpu.memory_space<vmem>>, vector<1x32xf32>
    %10 = vector.shape_cast %9 : vector<1x32xf32> to vector<32xf32>
    %11 = vector.shape_cast %10 : vector<32xf32> to vector<1x32xf32>
    %12 = vector.broadcast %11 : vector<1x32xf32> to vector<8x32xf32>
    %13 = arith.addf %8, %12 : vector<8x32xf32>
    %14 = arith.truncf %13 : vector<8x32xf32> to vector<8x32xbf16>
    %c0_8 = arith.constant 0 : index
    %c0_9 = arith.constant 0 : index
    %c0_10 = arith.constant 0 : index
    %15 = vector.load %arg5[%c0_8, %c0_9, %c0_10] : memref<1x8x8xf32, #tpu.memory_space<vmem>>, vector<1x8x8xf32>
    %16 = vector.shape_cast %15 : vector<1x8x8xf32> to vector<8x8xf32>
    %cst_11 = arith.constant 0.000000e+00 : f32
    %17 = vector.broadcast %cst_11 : f32 to vector<8x8xf32>
    %18 = arith.cmpf oeq, %16, %17 : vector<8x8xf32>
    %cst_12 = arith.constant -1.000000e+09 : f32
    %cst_13 = arith.constant 0.000000e+00 : f32
    %19 = vector.broadcast %cst_12 : f32 to vector<8x8xf32>
    %20 = vector.broadcast %cst_13 : f32 to vector<8x8xf32>
    %21 = arith.select %18, %19, %20 : vector<8x8xi1>, vector<8x8xf32>
    %c3 = arith.constant 3 : index
    %c0_14 = arith.constant 0 : index
    %c0_15 = arith.constant 0 : index
    %22 = vector.load %arg6[%c3, %c0_14, %c0_15] : memref<4x32x32xbf16, #tpu.memory_space<vmem>>, vector<1x32x32xbf16>
    %23 = vector.shape_cast %22 : vector<1x32x32xbf16> to vector<32x32xbf16>
    %24 = vector.extract_strided_slice %14 {offsets = [0, 0], sizes = [8, 8], strides = [1, 1]} : vector<8x32xbf16> to vector<8x8xbf16>
    %c0_16 = arith.constant 0 : index
    %c0_17 = arith.constant 0 : index
    %25 = vector.load %arg10[%c0_16, %c0_17] : memref<32x8xbf16, #tpu.memory_space<vmem>>, vector<8x8xbf16>
    %c0_18 = arith.constant 0 : index
    %c0_19 = arith.constant 0 : index
    %26 = vector.load %arg11[%c0_18, %c0_19] : memref<8x32xbf16, #tpu.memory_space<vmem>>, vector<8x8xbf16>
    %cst_20 = arith.constant dense<0.000000e+00> : vector<8x8xf32>
    %27 = tpu.matmul %24, %25, %cst_20 {dimension_numbers = #tpu.dot_dimension_numbers<[1], [0], [0], [1], [0, 0, 1, 1], [], []>} : vector<8x8xbf16>, vector<8x8xbf16>, vector<8x8xf32> -> vector<8x8xf32>
    %28 = arith.addf %27, %21 : vector<8x8xf32>
    %cst_21 = arith.constant dense<0xFF800000> : vector<8xf32>
    %29 = vector.multi_reduction <maximumf>, %28, %cst_21 [1] : vector<8x8xf32> to vector<8xf32>
    %30 = vector.shape_cast %29 : vector<8xf32> to vector<8x1xf32>
    %31 = vector.broadcast %30 : vector<8x1xf32> to vector<8x8xf32>
    %32 = arith.subf %28, %31 : vector<8x8xf32>
    %33 = math.exp %32 : vector<8x8xf32>
    %cst_22 = arith.constant dense<0.000000e+00> : vector<8xf32>
    %34 = vector.multi_reduction <add>, %33, %cst_22 [1] : vector<8x8xf32> to vector<8xf32>
    %35 = vector.shape_cast %34 : vector<8xf32> to vector<8x1xf32>
    %36 = tpu.reciprocal %35 {approx = true} : vector<8x1xf32> -> vector<8x1xf32>
    %37 = arith.truncf %33 : vector<8x8xf32> to vector<8x8xbf16>
    %cst_23 = arith.constant dense<0.000000e+00> : vector<8x8xf32>
    %38 = tpu.matmul %37, %26, %cst_23 {dimension_numbers = #tpu.dot_dimension_numbers<[1], [0], [0], [1], [0, 0, 1, 1], [], []>} : vector<8x8xbf16>, vector<8x8xbf16>, vector<8x8xf32> -> vector<8x8xf32>
    %39 = vector.broadcast %36 : vector<8x1xf32> to vector<8x8xf32>
    %40 = arith.mulf %38, %39 : vector<8x8xf32>
    %41 = vector.broadcast %36 : vector<8x1xf32> to vector<8x8xf32>
    %42 = arith.mulf %33, %41 : vector<8x8xf32>
    %43 = arith.truncf %40 : vector<8x8xf32> to vector<8x8xbf16>
    %44 = vector.extract_strided_slice %23 {offsets = [0, 0], sizes = [8, 32], strides = [1, 1]} : vector<32x32xbf16> to vector<8x32xbf16>
    %cst_24 = arith.constant dense<0.000000e+00> : vector<8x32xf32>
    %45 = tpu.matmul %43, %44, %cst_24 {dimension_numbers = #tpu.dot_dimension_numbers<[1], [0], [0], [1], [0, 0, 1, 1], [], []>} : vector<8x8xbf16>, vector<8x32xbf16>, vector<8x32xf32> -> vector<8x32xf32>
    %46 = vector.extract_strided_slice %14 {offsets = [0, 8], sizes = [8, 8], strides = [1, 1]} : vector<8x32xbf16> to vector<8x8xbf16>
    %c8 = arith.constant 8 : index
    %c0_25 = arith.constant 0 : index
    %47 = vector.load %arg10[%c8, %c0_25] : memref<32x8xbf16, #tpu.memory_space<vmem>>, vector<8x8xbf16>
    %c0_26 = arith.constant 0 : index
    %c8_27 = arith.constant 8 : index
    %48 = vector.load %arg11[%c0_26, %c8_27] : memref<8x32xbf16, #tpu.memory_space<vmem>>, vector<8x8xbf16>
    %cst_28 = arith.constant dense<0.000000e+00> : vector<8x8xf32>
    %49 = tpu.matmul %46, %47, %cst_28 {dimension_numbers = #tpu.dot_dimension_numbers<[1], [0], [0], [1], [0, 0, 1, 1], [], []>} : vector<8x8xbf16>, vector<8x8xbf16>, vector<8x8xf32> -> vector<8x8xf32>
    %50 = arith.addf %49, %21 : vector<8x8xf32>
    %cst_29 = arith.constant dense<0xFF800000> : vector<8xf32>
    %51 = vector.multi_reduction <maximumf>, %50, %cst_29 [1] : vector<8x8xf32> to vector<8xf32>
    %52 = vector.shape_cast %51 : vector<8xf32> to vector<8x1xf32>
    %53 = vector.broadcast %52 : vector<8x1xf32> to vector<8x8xf32>
    %54 = arith.subf %50, %53 : vector<8x8xf32>
    %55 = math.exp %54 : vector<8x8xf32>
    %cst_30 = arith.constant dense<0.000000e+00> : vector<8xf32>
    %56 = vector.multi_reduction <add>, %55, %cst_30 [1] : vector<8x8xf32> to vector<8xf32>
    %57 = vector.shape_cast %56 : vector<8xf32> to vector<8x1xf32>
    %58 = tpu.reciprocal %57 {approx = true} : vector<8x1xf32> -> vector<8x1xf32>
    %59 = arith.truncf %55 : vector<8x8xf32> to vector<8x8xbf16>
    %cst_31 = arith.constant dense<0.000000e+00> : vector<8x8xf32>
    %60 = tpu.matmul %59, %48, %cst_31 {dimension_numbers = #tpu.dot_dimension_numbers<[1], [0], [0], [1], [0, 0, 1, 1], [], []>} : vector<8x8xbf16>, vector<8x8xbf16>, vector<8x8xf32> -> vector<8x8xf32>
    %61 = vector.broadcast %58 : vector<8x1xf32> to vector<8x8xf32>
    %62 = arith.mulf %60, %61 : vector<8x8xf32>
    %63 = vector.broadcast %58 : vector<8x1xf32> to vector<8x8xf32>
    %64 = arith.mulf %55, %63 : vector<8x8xf32>
    %65 = arith.addf %42, %64 : vector<8x8xf32>
    %66 = arith.truncf %62 : vector<8x8xf32> to vector<8x8xbf16>
    %67 = vector.extract_strided_slice %23 {offsets = [8, 0], sizes = [8, 32], strides = [1, 1]} : vector<32x32xbf16> to vector<8x32xbf16>
    %cst_32 = arith.constant dense<0.000000e+00> : vector<8x32xf32>
    %68 = tpu.matmul %66, %67, %cst_32 {dimension_numbers = #tpu.dot_dimension_numbers<[1], [0], [0], [1], [0, 0, 1, 1], [], []>} : vector<8x8xbf16>, vector<8x32xbf16>, vector<8x32xf32> -> vector<8x32xf32>
    %69 = arith.addf %45, %68 : vector<8x32xf32>
    %70 = vector.extract_strided_slice %14 {offsets = [0, 16], sizes = [8, 8], strides = [1, 1]} : vector<8x32xbf16> to vector<8x8xbf16>
    %c16 = arith.constant 16 : index
    %c0_33 = arith.constant 0 : index
    %71 = vector.load %arg10[%c16, %c0_33] : memref<32x8xbf16, #tpu.memory_space<vmem>>, vector<8x8xbf16>
    %c0_34 = arith.constant 0 : index
    %c16_35 = arith.constant 16 : index
    %72 = vector.load %arg11[%c0_34, %c16_35] : memref<8x32xbf16, #tpu.memory_space<vmem>>, vector<8x8xbf16>
    %cst_36 = arith.constant dense<0.000000e+00> : vector<8x8xf32>
    %73 = tpu.matmul %70, %71, %cst_36 {dimension_numbers = #tpu.dot_dimension_numbers<[1], [0], [0], [1], [0, 0, 1, 1], [], []>} : vector<8x8xbf16>, vector<8x8xbf16>, vector<8x8xf32> -> vector<8x8xf32>
    %74 = arith.addf %73, %21 : vector<8x8xf32>
    %cst_37 = arith.constant dense<0xFF800000> : vector<8xf32>
    %75 = vector.multi_reduction <maximumf>, %74, %cst_37 [1] : vector<8x8xf32> to vector<8xf32>
    %76 = vector.shape_cast %75 : vector<8xf32> to vector<8x1xf32>
    %77 = vector.broadcast %76 : vector<8x1xf32> to vector<8x8xf32>
    %78 = arith.subf %74, %77 : vector<8x8xf32>
    %79 = math.exp %78 : vector<8x8xf32>
    %cst_38 = arith.constant dense<0.000000e+00> : vector<8xf32>
    %80 = vector.multi_reduction <add>, %79, %cst_38 [1] : vector<8x8xf32> to vector<8xf32>
    %81 = vector.shape_cast %80 : vector<8xf32> to vector<8x1xf32>
    %82 = tpu.reciprocal %81 {approx = true} : vector<8x1xf32> -> vector<8x1xf32>
    %83 = arith.truncf %79 : vector<8x8xf32> to vector<8x8xbf16>
    %cst_39 = arith.constant dense<0.000000e+00> : vector<8x8xf32>
    %84 = tpu.matmul %83, %72, %cst_39 {dimension_numbers = #tpu.dot_dimension_numbers<[1], [0], [0], [1], [0, 0, 1, 1], [], []>} : vector<8x8xbf16>, vector<8x8xbf16>, vector<8x8xf32> -> vector<8x8xf32>
    %85 = vector.broadcast %82 : vector<8x1xf32> to vector<8x8xf32>
    %86 = arith.mulf %84, %85 : vector<8x8xf32>
    %87 = vector.broadcast %82 : vector<8x1xf32> to vector<8x8xf32>
    %88 = arith.mulf %79, %87 : vector<8x8xf32>
    %89 = arith.addf %65, %88 : vector<8x8xf32>
    %90 = arith.truncf %86 : vector<8x8xf32> to vector<8x8xbf16>
    %91 = vector.extract_strided_slice %23 {offsets = [16, 0], sizes = [8, 32], strides = [1, 1]} : vector<32x32xbf16> to vector<8x32xbf16>
    %cst_40 = arith.constant dense<0.000000e+00> : vector<8x32xf32>
    %92 = tpu.matmul %90, %91, %cst_40 {dimension_numbers = #tpu.dot_dimension_numbers<[1], [0], [0], [1], [0, 0, 1, 1], [], []>} : vector<8x8xbf16>, vector<8x32xbf16>, vector<8x32xf32> -> vector<8x32xf32>
    %93 = arith.addf %69, %92 : vector<8x32xf32>
    %94 = vector.extract_strided_slice %14 {offsets = [0, 24], sizes = [8, 8], strides = [1, 1]} : vector<8x32xbf16> to vector<8x8xbf16>
    %c24 = arith.constant 24 : index
    %c0_41 = arith.constant 0 : index
    %95 = vector.load %arg10[%c24, %c0_41] : memref<32x8xbf16, #tpu.memory_space<vmem>>, vector<8x8xbf16>
    %c0_42 = arith.constant 0 : index
    %c24_43 = arith.constant 24 : index
    %96 = vector.load %arg11[%c0_42, %c24_43] : memref<8x32xbf16, #tpu.memory_space<vmem>>, vector<8x8xbf16>
    %cst_44 = arith.constant dense<0.000000e+00> : vector<8x8xf32>
    %97 = tpu.matmul %94, %95, %cst_44 {dimension_numbers = #tpu.dot_dimension_numbers<[1], [0], [0], [1], [0, 0, 1, 1], [], []>} : vector<8x8xbf16>, vector<8x8xbf16>, vector<8x8xf32> -> vector<8x8xf32>
    %98 = arith.addf %97, %21 : vector<8x8xf32>
    %cst_45 = arith.constant dense<0xFF800000> : vector<8xf32>
    %99 = vector.multi_reduction <maximumf>, %98, %cst_45 [1] : vector<8x8xf32> to vector<8xf32>
    %100 = vector.shape_cast %99 : vector<8xf32> to vector<8x1xf32>
    %101 = vector.broadcast %100 : vector<8x1xf32> to vector<8x8xf32>
    %102 = arith.subf %98, %101 : vector<8x8xf32>
    %103 = math.exp %102 : vector<8x8xf32>
    %cst_46 = arith.constant dense<0.000000e+00> : vector<8xf32>
    %104 = vector.multi_reduction <add>, %103, %cst_46 [1] : vector<8x8xf32> to vector<8xf32>
    %105 = vector.shape_cast %104 : vector<8xf32> to vector<8x1xf32>
    %106 = tpu.reciprocal %105 {approx = true} : vector<8x1xf32> -> vector<8x1xf32>
    %107 = arith.truncf %103 : vector<8x8xf32> to vector<8x8xbf16>
    %cst_47 = arith.constant dense<0.000000e+00> : vector<8x8xf32>
    %108 = tpu.matmul %107, %96, %cst_47 {dimension_numbers = #tpu.dot_dimension_numbers<[1], [0], [0], [1], [0, 0, 1, 1], [], []>} : vector<8x8xbf16>, vector<8x8xbf16>, vector<8x8xf32> -> vector<8x8xf32>
    %109 = vector.broadcast %106 : vector<8x1xf32> to vector<8x8xf32>
    %110 = arith.mulf %108, %109 : vector<8x8xf32>
    %111 = vector.broadcast %106 : vector<8x1xf32> to vector<8x8xf32>
    %112 = arith.mulf %103, %111 : vector<8x8xf32>
    %113 = arith.addf %89, %112 : vector<8x8xf32>
    %114 = arith.truncf %110 : vector<8x8xf32> to vector<8x8xbf16>
    %115 = vector.extract_strided_slice %23 {offsets = [24, 0], sizes = [8, 32], strides = [1, 1]} : vector<32x32xbf16> to vector<8x32xbf16>
    %cst_48 = arith.constant dense<0.000000e+00> : vector<8x32xf32>
    %116 = tpu.matmul %114, %115, %cst_48 {dimension_numbers = #tpu.dot_dimension_numbers<[1], [0], [0], [1], [0, 0, 1, 1], [], []>} : vector<8x8xbf16>, vector<8x32xbf16>, vector<8x32xf32> -> vector<8x32xf32>
    %117 = arith.addf %93, %116 : vector<8x32xf32>
    %c3_49 = arith.constant 3 : index
    %c0_50 = arith.constant 0 : index
    %118 = vector.load %arg7[%c3_49, %c0_50] : memref<4x32xf32, #tpu.memory_space<vmem>>, vector<1x32xf32>
    %119 = vector.shape_cast %118 : vector<1x32xf32> to vector<32xf32>
    %120 = vector.shape_cast %119 : vector<32xf32> to vector<1x32xf32>
    %121 = vector.broadcast %120 : vector<1x32xf32> to vector<8x32xf32>
    %122 = arith.addf %117, %121 : vector<8x32xf32>
    %c0_51 = arith.constant 0 : index
    %c0_52 = arith.constant 0 : index
    %c0_53 = arith.constant 0 : index
    %123 = vector.load %arg8[%c0_51, %c0_52, %c0_53] : memref<1x8x32xf32, #tpu.memory_space<vmem>>, vector<1x8x32xf32>
    %124 = vector.shape_cast %123 : vector<1x8x32xf32> to vector<8x32xf32>
    %125 = vector.shape_cast %122 : vector<8x32xf32> to vector<1x8x32xf32>
    tpu.vector_store %arg8[%c0_51, %c0_52, %c0_53], %125 {strides = array<i32>} : memref<1x8x32xf32, #tpu.memory_space<vmem>>, vector<1x8x32xf32>,
    %cst_54 = arith.constant 2.500000e-01 : f32
    %126 = vector.broadcast %cst_54 : f32 to vector<8x8xf32>
    %127 = arith.mulf %113, %126 : vector<8x8xf32>
    %c0_55 = arith.constant 0 : index
    %c0_56 = arith.constant 0 : index
    %c0_57 = arith.constant 0 : index
    %128 = vector.load %arg9[%c0_55, %c0_56, %c0_57] : memref<1x8x8xf32, #tpu.memory_space<vmem>>, vector<1x8x8xf32>
    %129 = vector.shape_cast %128 : vector<1x8x8xf32> to vector<8x8xf32>
    %130 = vector.shape_cast %127 : vector<8x8xf32> to vector<1x8x8xf32>
    tpu.vector_store %arg9[%c0_55, %c0_56, %c0_57], %130 {strides = array<i32>} : memref<1x8x8xf32, #tpu.memory_space<vmem>>, vector<1x8x8xf32>,
    return
  }
  func.func @transform_0(%arg0: i32, %arg1: i32) -> (i32, i32, i32) {
    %c0_i32 = arith.constant 0 : i32
    %c0_i32_0 = arith.constant 0 : i32
    return %arg0, %arg1, %c0_i32 : i32, i32, i32
  }
  func.func @transform_1(%arg0: i32, %arg1: i32) -> (i32, i32, i32) {
    %c0_i32 = arith.constant 0 : i32
    %c0_i32_0 = arith.constant 0 : i32
    %c0_i32_1 = arith.constant 0 : i32
    return %arg0, %c0_i32, %c0_i32_0 : i32, i32, i32
  }
  func.func @transform_2(%arg0: i32, %arg1: i32) -> (i32, i32, i32) {
    %c0_i32 = arith.constant 0 : i32
    %c0_i32_0 = arith.constant 0 : i32
    %c0_i32_1 = arith.constant 0 : i32
    return %arg0, %c0_i32, %c0_i32_0 : i32, i32, i32
  }
  func.func @transform_3(%arg0: i32, %arg1: i32) -> (i32, i32, i32) {
    %c0_i32 = arith.constant 0 : i32
    %c0_i32_0 = arith.constant 0 : i32
    return %arg0, %arg1, %c0_i32 : i32, i32, i32
  }
  func.func @transform_4(%arg0: i32, %arg1: i32) -> (i32, i32, i32) {
    %c0_i32 = arith.constant 0 : i32
    %c0_i32_0 = arith.constant 0 : i32
    %c0_i32_1 = arith.constant 0 : i32
    %c0_i32_2 = arith.constant 0 : i32
    return %c0_i32, %c0_i32_0, %c0_i32_1 : i32, i32, i32
  }
  func.func @transform_5(%arg0: i32, %arg1: i32) -> (i32, i32) {
    %c0_i32 = arith.constant 0 : i32
    %c0_i32_0 = arith.constant 0 : i32
    %c0_i32_1 = arith.constant 0 : i32
    return %c0_i32, %c0_i32_0 : i32, i32
  }
  func.func @transform_6(%arg0: i32, %arg1: i32) -> (i32, i32, i32) {
    %c0_i32 = arith.constant 0 : i32
    %c0_i32_0 = arith.constant 0 : i32
    return %arg0, %arg1, %c0_i32 : i32, i32, i32
  }
  func.func @transform_7(%arg0: i32, %arg1: i32) -> (i32, i32, i32) {
    %c0_i32 = arith.constant 0 : i32
    %c0_i32_0 = arith.constant 0 : i32
    return %arg0, %arg1, %c0_i32 : i32, i32, i32
  }
}

</mosaic_0001>

<bundles_post_ra>
// kernel: tpu_custom_call.1
= control target key start
LH: loop header
LB: loop body
LE: loop exit
PB: predicated region body
PF: predicated region fallthrough
CT: control target
= control target key end

     0   :  { %s1979_s0 = inlined_call_operand.hbm [shape: f32[2,8,32], index: 0, kind: input, shape index: {}]   ;;  %s1980_s1 = inlined_call_operand.hbm [shape: f32[2,8,32], index: 1, kind: input, shape index: {}]   ;;  %s1981_s2 = inlined_call_operand.hbm [shape: f32[2,8,32], index: 2, kind: input, shape index: {}]   ;;  %s1982_s3 = inlined_call_operand.hbm [shape: f32[2,8,8], index: 3, kind: input, shape index: {}]   ;;  %s1983_s4 = inlined_call_operand.hbm [shape: bf16[4,32,32], index: 4, kind: input, shape index: {}]   ;;  %s1984_s5 = inlined_call_operand.vmem [shape: f32[4,32], index: 5, kind: input, shape index: {}]   ;;  %s1985_s6 = inlined_call_operand.hbm [shape: f32[2,8,32], index: 6, kind: output, shape index: {0}]   ;;  %s1986_s7 = inlined_call_operand.hbm [shape: f32[2,8,8], index: 7, kind: output, shape index: {1}]  }
   0x1   :  { %1993 = sst [smem:[#allocation28_spill]] %s1979_s0 }
   0x2   :  { %1994 = sst [smem:[#allocation29_spill]] %s1980_s1 }
   0x3   :  { %1995 = sst [smem:[#allocation30_spill]] %s1983_s4 }
   0x4   :  { %13 = vsyncpa [#allocation5], 0 }
   0x5   :  { %15 = vsyncpa [#allocation5 + $0x1], 0 }
   0x6   :  { %16 = vsyncpa [#allocation8], 0 }
   0x7   :  { %18 = vsyncpa [#allocation8 + $0x1], 0 }
   0x8   :  { %19 = vsyncpa [#allocation11], 0 }
   0x9   :  { %21 = vsyncpa [#allocation11 + $0x1], 0 }
   0xa   :  { %22 = vsyncpa [#allocation6], 0 }
   0xb   :  { %24 = vsyncpa [#allocation6 + $0x1], 0 }
   0xc   :  { %25 = vsyncpa [#allocation15], 0 }
   0xd   :  { %27 = vsyncpa [#allocation15 + $0x1], 0  ;;  %s1692_s24 = smov 0   ;;  %s1694_s25 = smov 0  }
   0xe   :  { %s1696_s26 = smov 0   ;;  %s1698_s27 = smov 0  }
   0xf   :  { %s1700_s28 = smov 0   ;;  %s1702_s29 = smov 0  }
  0x10 LB: > { %1996 = sst [smem:[#allocation22_spill]] %s1623_s24  ;;  %s1723_s30 = sadd.s32 4294967295, %s1643_s29   ;;  %s1643_s29 = sphi %s1702_s29, %s33_s29   ;;  %s1639_s28 = sphi %s1700_s28, %s2016_s28   ;;  %s1635_s27 = sphi %s1698_s27, %s2015_s27   ;;  %s1631_s26 = sphi %s1696_s26, %s2014_s26   ;;  %s1627_s25 = sphi %s1694_s25, %s2018_s25   ;;  %s1623_s24 = sphi %s1692_s24, %s2017_s24  }
  0x11   : > { %1997 = sst [smem:[#allocation23_spill]] %s1631_s26  ;;  %s1177_s8 = sadd.s32 4294967294, %s1643_s29  }
  0x12   : > { %1998 = sst [smem:[#allocation24_spill]] %s1639_s28  ;;  %p67_p0 = scmp.ne.s32.totalorder %s1627_s25, %s1623_s24 }
  0x13   : > { %p68_p1 = scmp.eq.s32.totalorder %s1723_s30, 0  ;;  %p215_p2 = scmp.eq.s32.totalorder %s1723_s30, 1 }
  0x14   : > { %p221_p3 = scmp.eq.s32.totalorder %s1177_s8, 1  ;;  %p1178_p5 = scmp.ge.s32.totalorder %s1643_s29, 1 }
  0x15   : > { %p1732_p4 = por %p68_p1, %p67_p0  ;;  %p256_p7 = scmp.lt.s32.totalorder %s1643_s29, 3 }
  0x16   : > { %p1737_p6 = por %p221_p3, %p67_p0  ;;  %s2002_s4 = sld [smem:[#allocation30_spill]] }
  0x17   : > { %p1745_p8 = pnand %p1178_p5, %p256_p7  ;;  %s1645_s15 = smov [#allocation12]  }
  0x18   : > { %s2000_s10 = scalar_select %p1737_p6, 1, 0 }
  0x19   : > { %p1264_p9 = pneg %p1745_p8  ;;  %s269_s16 = sshll.u32 %s1645_s15, 4  ;;  %s270_s16 = int_to_ptr.vmem [resolvable:$true] %s269_s16 }
  0x1a   : > { %2001 = sst [smem:[#allocation25_spill]] %s2000_s10  ;;  %p1180_p11 = scmp.ge.s32.totalorder %s1643_s29, 2 }
  0x1b   : > { %p1265_p10 = pnand %p1264_p9, %p68_p1  ;;  %s1646_s17 = smov 64  }
  0x1c   : > { %s267_s13 = sshll.u32 %s2002_s4, 4  ;;  %s1647_s18 = smov 4   ;;  %s268_s13 = int_to_ptr.hbm [resolvable:$true] %s267_s13 }
  0x1d   : > { %1267 = dma.hbm_to_vmem [thread:$0]  (!%p1265_p10), %s268_s13, 1024, %s270_s16, [#allocation11], %s1646_s17, %s1646_s17, %s1647_s18  }
  0x1e   : > { %s45_s19 = sadd.s32 1, %s1639_s28  ;;  %s54_s20 = sadd.s32 1, %s1631_s26 }
  0x1f   : > { %p47_p12 = scmp.ge.s32.totalorder %s45_s19, 2  ;;  %p61_p13 = scmp.ne.s32.totalorder %s1631_s26, %s1627_s25 }
  0x20   : > { %p62_p0 = scmp.eq.s32.totalorder %s1643_s29, 0  ;;  %p1289_p7 = scmp.lt.s32.totalorder %s1643_s29, 2 }
  0x21   : > { %s2020_s19 = smov (%p47_p12, %s45_s19), 0  ;;  %p1763_p5 = por %p215_p2, %p61_p13 }
  0x22   : > { %2004 = sst [smem:[#allocation26_spill]] %s2020_s19  ;;  %p63_p3 = por %p62_p0, %p61_p13 }
  0x23   : > { %s49_s22 = ssub.s32 %s1639_s28, %s2020_s19  ;;  %s286_s23 = sand.u32 1, %s1631_s26  }
  0x24   : > { %p52_p9 = scmp.eq.s32.totalorder %s49_s22, 0  ;;  %s1771_s8 = sshll.u32 %s286_s23, 3 }
  0x25   : > { %s1182_s11 = sshll.u32 %s1639_s28, 3  ;;  %p1777_p10 = pnand %p1289_p7, %p63_p3 }
  0x26   : > { %s1775_s12 = scalar_select %p52_p9, %s1631_s26, %s54_s20  }
  0x27   : > { %s1991_s15 = sand.u32 1, %s1643_s29   ;;  %s2008_s1 = sld [smem:[#allocation29_spill]] }
  0x28   : > { %2006 = sst [smem:[#allocation27_spill]] %s1775_s12  ;;  %s310_s4 = scalar_lea.vmem [#allocation7], %s1771_s8 }
  0x29   : > { %s318_s19 = sshll.u32 %s310_s4, 4  ;;  %s307_s20 = scalar_lea.sflag [#allocation8], %s1991_s15  ;;  %s319_s19 = int_to_ptr.vmem [resolvable:$true] %s318_s19 }
  0x2a   : > { %s2009_s0 = sld [smem:[#allocation28_spill]]  ;;  %s290_s16 = scalar_lea.vmem [#allocation4], %s1771_s8 }
  0x2b   : > { %s299_s17 = sshll.u32 %s290_s16, 4  ;;  %s353_s12 = scalar_lea.hbm %s1982_s3, %s1182_s11  ;;  %s300_s17 = int_to_ptr.vmem [resolvable:$true] %s299_s17 }
  0x2c   : > { %s355_s16 = sshll.u32 %s353_s12, 4  ;;  %s356_s16 = int_to_ptr.hbm [resolvable:$true] %s355_s16 }
  0x2d   : > { %s314_s18 = scalar_lea.hbm %s2008_s1, %s1182_s11  ;;  %s333_s1 = scalar_lea.hbm %s1981_s2, %s1182_s11 }
  0x2e   : > { %s316_s22 = sshll.u32 %s314_s18, 4  ;;  %s287_s18 = scalar_lea.sflag [#allocation5], %s286_s23  ;;  %s317_s22 = int_to_ptr.hbm [resolvable:$true] %s316_s22 }
  0x2f   : > { %1274 = dma.hbm_to_vmem [thread:$0]  (!%p1777_p10), %s317_s22, 128, %s319_s19, %s307_s20  }
  0x30   : > { %s295_s26 = scalar_lea.hbm %s2009_s0, %s1182_s11  ;;  %s335_s19 = sshll.u32 %s333_s1, 4  ;;  %s336_s19 = int_to_ptr.hbm [resolvable:$true] %s335_s19 }
  0x31   : > { %s297_s10 = sshll.u32 %s295_s26, 4  ;;  %s329_s22 = scalar_lea.vmem [#allocation9], %s1771_s8  ;;  %s298_s10 = int_to_ptr.hbm [resolvable:$true] %s297_s10 }
  0x32   : > { %1271 = dma.hbm_to_vmem [thread:$0]  (!%p1777_p10), %s298_s10, 128, %s300_s17, %s287_s18  }
  0x33   : > { %s337_s24 = sshll.u32 %s329_s22, 4  ;;  %s348_s23 = scalar_lea.vmem [#allocation10], %s1771_s8  ;;  %s338_s24 = int_to_ptr.vmem [resolvable:$true] %s337_s24 }
  0x34   : > { %1277 = dma.hbm_to_vmem [thread:$0]  (!%p1777_p10), %s336_s19, 128, %s338_s24, %s307_s20  }
  0x35   : > { %s357_s0 = sshll.u32 %s348_s23, 4  ;;  %s2010_s10 = sand.u32 1, %s1643_s29   ;;  %s358_s0 = int_to_ptr.vmem [resolvable:$true] %s357_s0 }
  0x36   : > { %s345_s17 = scalar_lea.sflag [#allocation11], %s2010_s10  ;;  %366 = sbr.rel (%p1745_p8) target bundleno = 1339 (0x53b), region = 44 }
  0x37   : > { %1280 = dma.hbm_to_vmem [thread:$0]  (!%p1777_p10), %s356_s16, 128, %s358_s0, %s345_s17  }
  0x38   : > { %s1813_s1 = sand.u32 (!%p1745_p8), 1, %s1627_s25  }
  0x39   : > { %s1816_s24 = sshll.u32 (!%p1745_p8), %s1813_s1, 3  ;;  %s369_s8 = scalar_lea.sflag (!%p1745_p8), [#allocation5], %s1813_s1 }
  0x3a   : > { %s372_s11 = scalar_lea.vmem (!%p1745_p8), [#allocation4], %s1816_s24 }
  0x3b   : > { %1598 = dma.done.wait (%p1732_p4), %s369_s8, 128  }
  0x3c   : > { %1600 = vsyncadd (%p1732_p4), %s369_s8, 4294967168  ;;  %s378_s0 = sand.u32 1, %s1723_s30   ;;  %s382_s13 = scalar_lea.vmem [#allocation7], %s1816_s24 }
  0x3d   : > { %s379_s14 = scalar_lea.sflag [#allocation8], %s378_s0 }
  0x3e   : > { %1602 = dma.done.wait (%p1732_p4), %s379_s14, 256  }
  0x3f   : > { %1604 = vsyncadd (%p1732_p4), %s379_s14, 4294967040  ;;  %s392_s15 = scalar_lea.vmem [#allocation9], %s1816_s24  ;;  %s399_s20 = scalar_lea.sflag [#allocation11], %s378_s0 }
  0x40   : > { %s402_s18 = scalar_lea.vmem [#allocation10], %s1816_s24 }
  0x41   : > { %1606 = dma.done.wait (%p1732_p4), %s399_s20, 128  }
  0x42   : > { %1608 = vsyncadd (%p1732_p4), %s399_s20, 4294967168 }
  0x43   : > { %1610 = dma.done.wait (%p68_p1), [#allocation11], 1024  }
  0x44   : > { %1612 = vsyncadd (%p68_p1), [#allocation11], 4294966272  ;;  %v1243_v0 = vld [vmem:[#allocation12 + $0x18] sm:$0xff]  ;;  %v1242_v1 = vld [vmem:[#allocation12 + $0x10] sm:$0xff]  ;;  %vm487_vm0 = vcmask 261120   ;;  %s1648_s22 = smov 112  }
  0x45   : > { %497 = vmatpush.bf16.msra.mxu0 %v1243_v0  ;;  %v464_v2 = vld [vmem:[%s382_s13] sm:$0xff]  ;;  %v1247_v4 = vld [vmem:[#allocation12 + $0x8] sm:$0xff]  ;;  %v1246_v5 = vld [vmem:[#allocation12] sm:$0xff]  ;;  %s1649_s26 = smov 104   ;;  %vm575_vm1 = vcmask 60416   ;;  %vm635_vm2 = vcmask 1043456  }
  0x46   : > { %v465_v3 = vpack.c.bf16 %v464_v2, %v464_v2  ;;  %613 = vmatpush.bf16.msra.mxu2 %v1247_v4  ;;  %v583_v6 = vld [vmem:[%s372_s11] sm:$0xff]  ;;  %vm631_vm3 = vcmask 64512   ;;  %v621_v33 = vld [vmem:[%s402_s18] sm:$0xff]  ;;  %v1650_v36 = vmov 0.0   ;;  %vm581_vm5 = vcmask 257024   ;;  %s1651_s16 = smov 120  }
  0x47   : > { %v584_v7 = vpack.c.bf16 %v583_v6, %v583_v6  ;;  %v1347_v8 = vld [vmem:[%s1984_s5 + $0x1] ss:$0 sm:$0xff]  ;;  %v1348_v12 = vld [vmem:[%s1984_s5] ss:$0 sm:$0xff]  ;;  %v1244_v24 = vld [vmem:[#allocation12 + $0x20] sm:$0xff]  ;;  %vm622_vm4 = vcmp.eq.f32.partialorder %v621_v33, 0.0 }
  0x48   : > { %v1245_v23 = vld [vmem:[#allocation12 + $0x28] sm:$0xff]  ;;  %v1866_v37 = vsel %vm622_vm4, -1e+09, %v1650_v36  ;;  %v625_v50 = vld [vmem:[#allocation12 + $0x30] sm:$0xf]  ;;  %s458_s23 = scalar_lea.vmem [#allocation14], %s1816_s24 }
  0x49   : > { %498 = vmatpush.bf16.msra.mxu0 %v1242_v1  ;;  %532 = vmatpush.bf16.msra.mxu1 %v1245_v23  ;;  %v466_v25 = vld [vmem:[%s392_s15] sm:$0xff]  ;;  %v772_v52 = vsel %vm635_vm2, %v625_v50, 0  ;;  %s1238_s10 = sshll.u32 %s1635_s27, 3  ;;  %s983_s0 = sshll.u32 %s458_s23, 4  ;;  %s984_s0 = int_to_ptr.vmem [resolvable:$true] %s983_s0 }
  0x4a   : > { %614 = vmatpush.bf16.msra.mxu2 %v1246_v5  ;;  %v467_v26 = vpack.c.bf16 %v466_v25, %v466_v25  ;;  %v1349_v44 = vld [vmem:[%s1984_s5 + $0x2] ss:$0 sm:$0xff]  ;;  %s981_s11 = scalar_lea.hbm %s1986_s7, %s1238_s10  ;;  %s955_s13 = scalar_lea.sflag [#allocation15], %s1813_s1 }
  0x4b   : > { %s985_s14 = sshll.u32 %s981_s11, 4  ;;  %s1537_s27 = scalar_lea.hbm %s1986_s7, 16  ;;  %s986_s14 = int_to_ptr.hbm [resolvable:$true] %s985_s14 }
  0x4c   : > { %1205 = vmatmul.msk.bf16.vlgmr.msra.gmra.mxu0 %vm487_vm0, %v465_v3  ;;  %s1531_s15 = sshra.s32 %s986_s14, 4  ;;  %s1532_s15 = int_to_ptr.hbm [resolvable:$true] %s1531_s15 }
  0x4d   : > { %1223 = vmatmul.msk.bf16.vlgmr.msra.gmra.mxu2 %vm487_vm0, %v584_v7  ;;  %533 = vmatpush.bf16.msra.mxu1 %v1244_v24  ;;  %s1533_s20 = scalar_lea.hbm %s1532_s15, 8  ;;  %p1538_p8 = scmp.lt.s32.totalorder %s1532_s15, %s1986_s7 }
  0x4e   : > { %p1534_p1 = scmp.ne.s32.totalorder %s1532_s15, %s1533_s20  ;;  %p1539_p12 = scmp.lt.s32.totalorder %s1537_s27, %s1533_s20 }
  0x50   : > { %1214 = vmatmul.msk.bf16.vlgmr.msra.gmra.mxu1 %vm487_vm0, %v467_v26  ;;  %p1535_p2 = pnand %p1534_p1, %p1763_p5  ;;  %p1540_p13 = por %p1539_p12, %p1538_p8 }
  0x52   : > { %p1536_p4 = pneg %p1535_p2 }
  0x54   : > { %p1541_p0 = pnand %p1540_p13, %p1536_p4 }
  0xc9   : > { %v500_v9 = vpop.f32.mrf.mxu0 }
  0xca   : > { %v501_v10 = vadd.f32 %v1347_v8, %v500_v9 }
  0xcc   : > { %539 = vxpose.xlu0.b32.start.end [1/1] (short) (narrow) %v501_v10, 32 }
  0xcd   : > { %v535_v45 = vpop.f32.mrf.mxu1 }
  0xce   : > { %v536_v46 = vadd.f32 %v1349_v44, %v535_v45 }
  0xd0   : > { %v616_v13 = vpop.f32.mrf.mxu2  ;;  %v580_v47 = vpack.c.bf16 %v536_v46, %v536_v46  ;;  %v626_v46 = vld [vmem:[#allocation12 + $0x34] sm:$0xf] }
  0xd1   : > { %v502_v11 = vpop.f32.mrf.mxu0  ;;  %v617_v14 = vadd.f32 %v1348_v12, %v616_v13 }
  0xd2   : > { %582 = vst.msk [vmem:[#allocation3] sm:$0xf] %vm581_vm5, %v580_v47  ;;  %v753_v47 = vsel %vm635_vm2, %v626_v46, 0 }
  0xd3   : > { %v620_v15 = vpack.c.bf16 %v617_v14, %v617_v14  ;;  %762 = vmatpush.bf16.msrb.mxu2 %v753_v47 }
  0xd5   : > { %v687_v16 = vunpack.c.l.b16 %v620_v15  ;;  %v537_v48 = vpop.f32.mrf.mxu1 }
  0xd6   : > { %v627_v48 = vld [vmem:[#allocation12 + $0x38] sm:$0xf] }
  0xd7   : > { %v1848_v17 = vpack.c.b16 %v687_v16, %v687_v16 }
  0xd8   : > { %v618_v18 = vpop.f32.mrf.mxu2 }
  0xd9   : > { %788 = vrot.lane.b32.xlu2 %v1848_v17, %s1648_s22  ;;  %v630_v49 = vld [vmem:[#allocation3] sm:$0xf] }
  0xda   : > { %v667_v51 = vsel %vm635_vm2, %v630_v49, 0  ;;  %v722_v61 = vunpack.c.l.b16 %v630_v49  ;;  %v849_v49 = vsel %vm635_vm2, %v627_v48, 0 }
  0xdb   : > { %858 = vmatpush.bf16.msra.mxu2 %v849_v49 }
  0xdc   : > { %v723_v62 = vpack.c.b16 %v722_v61, %v722_v61 }
  0xe1   : > { %866 = vrot.lane.b32.xlu2 %v1848_v17, %s1649_s26 }
 0x133   : > { %v789_v6 = vpop.permute.xlu2 %788 }
 0x13b   : > { %v867_v9 = vpop.permute.xlu2 %866 }
 0x170   : > { %v555_v19 = vpop.trf.xlu0 }
 0x171   : > { %v571_v20 = vpack.c.bf16 %v555_v19, %v555_v19 }
 0x173   : > { %576 = vst.msk [vmem:[#allocation2] sm:$0xf] %vm575_vm1, %v571_v20 }
 0x178   : > { %v556_v27 = vpop.trf.xlu0 }
 0x179   : > { %v572_v28 = vpack.c.bf16 %v556_v27, %v556_v27 }
 0x17a   : > { %v629_v21 = vld [vmem:[#allocation2] sm:$0xf] }
 0x17b   : > { %v637_v22 = vsel %vm635_vm2, %v629_v21, 0  ;;  %577 = vst.msk [vmem:[#allocation2 + $0x4] sm:$0xf] %vm575_vm1, %v572_v28 }
 0x17c   : > { %646 = vmatpush.bf16.msra.mxu3 %v637_v22 }
 0x17f   : > { %1224 = vmatmul.msk.bf16.vlgmr.msra.gmra.mxu3 %vm631_vm3, %v620_v15 }
 0x180   : > { %v557_v29 = vpop.trf.xlu0  ;;  %676 = vmatpush.bf16.msrb.mxu3 %v667_v51 }
 0x181   : > { %v573_v30 = vpack.c.bf16 %v557_v29, %v557_v29 }
 0x182   : > { %v685_v31 = vld [vmem:[#allocation2 + $0x4] sm:$0xf] }
 0x183   : > { %578 = vst.msk [vmem:[#allocation2 + $0x8] sm:$0xf] %vm575_vm1, %v573_v30  ;;  %v695_v32 = vsel %vm635_vm2, %v685_v31, 0 }
 0x184   : > { %704 = vmatpush.bf16.msrb.mxu0 %v695_v32  ;;  %781 = vmatpush.bf16.msra.mxu3 %v772_v52 }
 0x188   : > { %v558_v34 = vpop.trf.xlu0 }
 0x189   : > { %v574_v35 = vpack.c.bf16 %v558_v34, %v558_v34 }
 0x18a   : > { %v787_v41 = vld [vmem:[#allocation2 + $0x8] sm:$0xf] }
 0x18b   : > { %579 = vst.msk [vmem:[#allocation2 + $0xc] sm:$0xf] %vm575_vm1, %v574_v35  ;;  %v794_v42 = vsel %vm635_vm2, %v787_v41, 0 }
 0x18c   : > { %803 = vmatpush.bf16.msra.mxu0 %v794_v42 }
 0x192   : > { %v865_v57 = vld [vmem:[#allocation2 + $0xc] sm:$0xf] }
 0x193   : > { %v872_v60 = vsel %vm635_vm2, %v865_v57, 0 }
 0x202   : > { %v648_v38 = vpop.f32.mrf.mxu3 }
 0x203   : > { %v649_v39 = vadd.f32 %v648_v38, %v1866_v37 }
 0x205   : > { %v652_v40 = vsel %vm631_vm3, %v649_v39, -inf }
 0x206   : > { %653 = vmax.xlane.f32.xlu0 %v652_v40 }
 0x20a   : > { %v650_v43 = vpop.f32.mrf.mxu3 }
 0x279   : > { %v654_v53 = vpop.xlane.xlu0 %653 }
 0x27a   : > { %v655_v54 = vsub.f32 %v649_v39, %v654_v53  ;;  %v628_v53 = vld [vmem:[#allocation12 + $0x3c] sm:$0xf] }
 0x27c   : > { %v656_v55 = vmul.f32 1.442695, %v655_v54 }
 0x27e   : > { %1351 = vpow2.f32 %v656_v55  ;;  %v927_v55 = vsel %vm635_vm2, %v628_v53, 0 }
 0x284   : > { %v1876_v56 = vpop.eup %1351 }
 0x285   : > { %v658_v58 = vsel %vm631_vm3, %v1876_v56, 0.0  ;;  %v662_v59 = vpack.c.bf16 %v1876_v56, %v1876_v56 }
 0x286   : > { %659 = vadd.xlane.f32.xlu1 %v658_v58 }
 0x287   : > { %1225 = vmatmul.msk.bf16.vlgmr.msrb.gmra.mxu3 %vm631_vm3, %v662_v59 }
 0x288   : > { %881 = vmatpush.bf16.msrb.mxu3 %v872_v60 }
 0x29f   : > { %689 = vrot.lane.b32.xlu1 %v1848_v17, %s1651_s16 }
 0x2a7   : > { %724 = vrot.lane.b32.xlu1 %v723_v62, %s1651_s16 }
 0x2f9   : > { %v660_v63 = vpop.xlane.xlu1 %659 }
 0x2fa   : > { %1353 = vrcp.f32 %v660_v63 }
 0x300   : > { %v1885_v0 = vpop.eup %1353 }
 0x30a   : > { %v678_v1 = vpop.f32.mrf.mxu3 }
 0x30b   : > { %v682_v2 = vmul.f32 %v1885_v0, %v678_v1 }
 0x30d   : > { %v684_v3 = vpack.c.bf16 %v682_v2, %v682_v2 }
 0x30f   : > { %1229 = vmatmul.msk.bf16.vlgmr.msra.gmra.mxu3 %vm631_vm3, %v684_v3 }
 0x311   : > { %v690_v4 = vpop.permute.xlu1 %689 }
 0x312   : > { %v680_v5 = vpop.f32.mrf.mxu3  ;;  %1226 = vmatmul.msk.bf16.vlgmr.msrb.gmra.mxu0 %vm631_vm3, %v690_v4 }
 0x319   : > { %v725_v7 = vpop.permute.xlu1 %724 }
 0x31a   : > { %v730_v8 = vsel %vm635_vm2, %v725_v7, 0 }
 0x31b   : > { %739 = vmatpush.bf16.msrb.mxu1 %v730_v8 }
 0x31f   : > { %1233 = vmatmul.msk.bf16.vlgmr.msrb.gmra.mxu3 %vm631_vm3, %v867_v9 }
 0x322   : > { %1230 = vmatmul.msk.bf16.vlgmr.msra.gmra.mxu0 %vm631_vm3, %v789_v6 }
 0x38f   : > { %v706_v10 = vpop.f32.mrf.mxu0 }
 0x390   : > { %v707_v11 = vadd.f32 %v706_v10, %v1866_v37 }
 0x392   : > { %v1894_v12 = vpop.f32.mrf.mxu3  ;;  %v710_v13 = vsel %vm631_vm3, %v707_v11, -inf }
 0x393   : > { %711 = vmax.xlane.f32.xlu2 %v710_v13 }
 0x397   : > { %v708_v14 = vpop.f32.mrf.mxu0 }
 0x39a   : > { %v785_v15 = vpop.f32.mrf.mxu3 }
 0x39f   : > { %v805_v16 = vpop.f32.mrf.mxu0 }
 0x3a0   : > { %v806_v17 = vadd.f32 %v805_v16, %v1866_v37 }
 0x3a2   : > { %v883_v18 = vpop.f32.mrf.mxu3  ;;  %v809_v19 = vsel %vm631_vm3, %v806_v17, -inf }
 0x3a3   : > { %v884_v20 = vadd.f32 %v883_v18, %v1866_v37  ;;  %810 = vmax.xlane.f32.xlu1 %v809_v19 }
 0x3a5   : > { %v887_v21 = vsel %vm631_vm3, %v884_v20, -inf }
 0x3a6   : > { %888 = vmax.xlane.f32.xlu2 %v887_v21 }
 0x3a7   : > { %v807_v22 = vpop.f32.mrf.mxu0 }
 0x3aa   : > { %v885_v23 = vpop.f32.mrf.mxu3 }
 0x3bc   : > { %898 = vrot.lane.b32.xlu1 %v723_v62, %s1649_s26 }
 0x3be   : > { %820 = vrot.lane.b32.xlu2 %v723_v62, %s1648_s22  ;;  %v683_v62 = vmul.f32 %v1885_v0, %v1876_v56 }
 0x406   : > { %v712_v24 = vpop.xlane.xlu2 %711 }
 0x407   : > { %v713_v25 = vsub.f32 %v707_v11, %v712_v24 }
 0x409   : > { %v714_v26 = vmul.f32 1.442695, %v713_v25 }
 0x40b   : > { %1355 = vpow2.f32 %v714_v26 }
 0x411   : > { %v1356_v27 = vpop.eup %1355 }
 0x412   : > { %v716_v28 = vsel %vm631_vm3, %v1356_v27, 0.0  ;;  %v720_v29 = vpack.c.bf16 %v1356_v27, %v1356_v27 }
 0x413   : > { %717 = vadd.xlane.f32.xlu2 %v716_v28 }
 0x414   : > { %1227 = vmatmul.msk.bf16.vlgmr.msrb.gmra.mxu1 %vm631_vm3, %v720_v29 }
 0x416   : > { %v811_v30 = vpop.xlane.xlu1 %810 }
 0x417   : > { %v812_v31 = vsub.f32 %v806_v17, %v811_v30 }
 0x419   : > { %v813_v32 = vmul.f32 1.442695, %v812_v31  ;;  %v889_v33 = vpop.xlane.xlu2 %888 }
 0x41a   : > { %v890_v34 = vsub.f32 %v884_v20, %v889_v33 }
 0x41b   : > { %1357 = vpow2.f32 %v813_v32 }
 0x41c   : > { %v891_v35 = vmul.f32 1.442695, %v890_v34 }
 0x41e   : > { %1359 = vpow2.f32 %v891_v35 }
 0x421   : > { %v1358_v36 = vpop.eup %1357  ;;  %v821_v37 = vpop.permute.xlu2 %820 }
 0x422   : > { %v826_v38 = vsel %vm635_vm2, %v821_v37, 0  ;;  %v815_v39 = vsel %vm631_vm3, %v1358_v36, 0.0  ;;  %v819_v41 = vpack.c.bf16 %v1358_v36, %v1358_v36 }
 0x423   : > { %835 = vmatpush.bf16.msra.mxu1 %v826_v38  ;;  %816 = vadd.xlane.f32.xlu1 %v815_v39 }
 0x424   : > { %v1360_v40 = vpop.eup %1359 }
 0x425   : > { %v893_v42 = vsel %vm631_vm3, %v1360_v40, 0.0  ;;  %v897_v45 = vpack.c.bf16 %v1360_v40, %v1360_v40 }
 0x426   : > { %894 = vadd.xlane.f32.xlu2 %v893_v42  ;;  %1231 = vmatmul.msk.bf16.vlgmr.msra.gmra.mxu1 %vm631_vm3, %v819_v41 }
 0x427   : > { %936 = vmatpush.bf16.msrb.mxu1 %v927_v55 }
 0x42e   : > { %v899_v43 = vpop.permute.xlu1 %898 }
 0x42f   : > { %v904_v44 = vsel %vm635_vm2, %v899_v43, 0 }
 0x430   : > { %913 = vmatpush.bf16.msrb.mxu0 %v904_v44 }
 0x433   : > { %1234 = vmatmul.msk.bf16.vlgmr.msrb.gmra.mxu0 %vm631_vm3, %v897_v45 }
 0x486   : > { %v718_v50 = vpop.xlane.xlu2 %717 }
 0x487   : > { %1361 = vrcp.f32 %v718_v50 }
 0x48d   : > { %v1362_v51 = vpop.eup %1361 }
 0x48e   : > { %v746_v61 = vmul.f32 %v1362_v51, %v1356_v27 }
 0x490   : > { %v747_v1 = vadd.f32 %v746_v61, %v683_v62 }
 0x491   : > { %v741_v52 = vpop.f32.mrf.mxu1 }
 0x492   : > { %v745_v54 = vmul.f32 %v1362_v51, %v741_v52 }
 0x494   : > { %v748_v57 = vpack.c.bf16 %v745_v54, %v745_v54 }
 0x496   : > { %1228 = vmatmul.msk.bf16.vlgmr.msrb.gmra.mxu2 %vm631_vm3, %v748_v57  ;;  %v817_v58 = vpop.xlane.xlu1 %816 }
 0x497   : > { %1363 = vrcp.f32 %v817_v58 }
 0x499   : > { %v895_v59 = vpop.xlane.xlu2 %894  ;;  %v743_v60 = vpop.f32.mrf.mxu1 }
 0x49a   : > { %1365 = vrcp.f32 %v895_v59 }
 0x49d   : > { %v1364_v63 = vpop.eup %1363 }
 0x49e   : > { %v842_v2 = vmul.f32 %v1364_v63, %v1358_v36 }
 0x4a0   : > { %v1366_v3 = vpop.eup %1365  ;;  %v843_v4 = vadd.f32 %v842_v2, %v747_v1 }
 0x4a1   : > { %v920_v5 = vmul.f32 %v1366_v3, %v1360_v40 }
 0x4a3   : > { %v921_v6 = vadd.f32 %v920_v5, %v843_v4  ;;  %v837_v7 = vpop.f32.mrf.mxu1 }
 0x4a4   : > { %v841_v8 = vmul.f32 %v1364_v63, %v837_v7 }
 0x4a5   : > { %v947_v9 = vmul.f32 0.25, %v921_v6 }
 0x4a6   : > { %v844_v10 = vpack.c.bf16 %v841_v8, %v841_v8 }
 0x4a7   : > { %948 = vst.msk [vmem:[%s458_s23] sm:$0xff] %vm631_vm3, %v947_v9 }
 0x4a8   : > { %1232 = vmatmul.msk.bf16.vlgmr.msra.gmra.mxu2 %vm631_vm3, %v844_v10 }
 0x4ab   : > { %v839_v11 = vpop.f32.mrf.mxu1 }
 0x4b0   : > { %v915_v56 = vpop.f32.mrf.mxu0 }
 0x4b1   : > { %v919_v0 = vmul.f32 %v1366_v3, %v915_v56 }
 0x4b3   : > { %v922_v13 = vpack.c.bf16 %v919_v0, %v919_v0 }
 0x4b5   : > { %1235 = vmatmul.msk.bf16.vlgmr.msrb.gmra.mxu1 %vm631_vm3, %v922_v13 }
 0x4b8   : > { %v917_v14 = vpop.f32.mrf.mxu0 }
 0x4b9   : > { %1544 = shalt.err (!%p1541_p0)
}
 0x4ba   : > { %1261 = dma.vmem_to_hbm [thread:$0]  (%p1763_p5), %s984_s0, 128, %s986_s14, %s955_s13   ;;  %v1350_v20 = vld [vmem:[%s1984_s5 + $0x3] ss:$0 sm:$0xff] }
 0x4bb   : > { %s966_s26 = scalar_lea.hbm %s1985_s6, %s1238_s10  ;;  %s451_s16 = scalar_lea.vmem [#allocation13], %s1816_s24 }
 0x4bc   : > { %s968_s23 = sshll.u32 %s451_s16, 4  ;;  %s970_s17 = sshll.u32 %s966_s26, 4  ;;  %s969_s23 = int_to_ptr.vmem [resolvable:$true] %s968_s23  ;;  %s971_s17 = int_to_ptr.hbm [resolvable:$true] %s970_s17 }
 0x4bd   : > { %s950_s8 = scalar_lea.sflag [#allocation6], %s1813_s1  ;;  %s1559_s11 = sshra.s32 %s971_s17, 4  ;;  %s1560_s11 = int_to_ptr.hbm [resolvable:$true] %s1559_s11 }
 0x4be   : > { %s1561_s10 = scalar_lea.hbm %s1560_s11, 8  ;;  %s1565_s24 = scalar_lea.hbm %s1985_s6, 16 }
 0x4bf   : > { %p1562_p3 = scmp.ne.s32.totalorder %s1560_s11, %s1561_s10  ;;  %p1566_p10 = scmp.lt.s32.totalorder %s1560_s11, %s1985_s6 }
 0x4c0   : > { %p1567_p1 = scmp.lt.s32.totalorder %s1565_s24, %s1561_s10 }
 0x4c1   : > { %p1563_p7 = pnand %p1562_p3, %p1763_p5 }
 0x4c2   : > { %p1568_p2 = por %p1567_p1, %p1566_p10 }
 0x4c3   : > { %p1564_p9 = pneg %p1563_p7 }
 0x4c5   : > { %p1569_p4 = pnand %p1568_p2, %p1564_p9 }
 0x519   : > { %v764_v15 = vpop.f32.mrf.mxu2 }
 0x51a   : > { %v784_v18 = vadd.f32 %v1894_v12, %v764_v15 }
 0x521   : > { %v766_v16 = vpop.f32.mrf.mxu2 }
 0x52b   : > { %v860_v17 = vpop.f32.mrf.mxu2 }
 0x52c   : > { %v864_v19 = vadd.f32 %v860_v17, %v784_v18 }
 0x532   : > { %v938_v21 = vpop.f32.mrf.mxu1 }
 0x533   : > { %v942_v22 = vadd.f32 %v938_v21, %v864_v19  ;;  %v862_v23 = vpop.f32.mrf.mxu2 }
 0x535   : > { %v945_v24 = vadd.f32 %v1350_v20, %v942_v22 }
 0x537   : > { %946 = vst.msk [vmem:[%s451_s16] sm:$0xff] %vm487_vm0, %v945_v24 }
 0x538   : > { %1572 = shalt.err (!%p1569_p4)
}
 0x539   : > { %1260 = dma.vmem_to_hbm [thread:$0]  (%p1763_p5), %s969_s23, 128, %s971_s17, %s950_s8  }
 0x53a   : > { %v940_v12 = vpop.f32.mrf.mxu1 }
 0x53b PF: > { %s2011_s1 = sld [smem:[#allocation22_spill]]  ;;  %p1282_p8 = pnand %p1180_p11, %p1737_p6 }
 0x53d   : > { %p1283_p12 = pneg %p1282_p8 }
 0x541   : > { %s997_s18 = sand.u32 1, %s2011_s1  }
 0x542   : > { %s998_s9 = scalar_lea.sflag [#allocation6], %s997_s18 }
 0x543   : > { %1614 = dma.done.wait (%p1283_p12), %s998_s9, 128  }
 0x544   : > { %1616 = vsyncadd (%p1283_p12), %s998_s9, 4294967168  ;;  %s1008_s27 = scalar_lea.sflag [#allocation15], %s997_s18 }
 0x545   : > { %1618 = dma.done.wait (%p1283_p12), %s1008_s27, 128  }
 0x546   : > { %1620 = vsyncadd (%p1283_p12), %s1008_s27, 4294967168  ;;  %s33_s29 = sadd.s32 1, %s1643_s29   ;;  %s2013_s21 = sld [smem:[#allocation23_spill]] }
 0x547   : > { %p30_p13 = scmp.ge.s32.totalorder %s33_s29, 4   ;;  %s2014_s26 = sld [smem:[#allocation27_spill]] }
 0x548   : > { %s2015_s27 = sld [smem:[#allocation24_spill]]  ;;  %s2017_s24 = smov %s1627_s25 }
 0x549   : > { %s2016_s28 = sld [smem:[#allocation26_spill]]  ;;  %32 = sbr.rel (!%p30_p13) target bundleno = 16 (0x10), region = 154 }
 0x54c   : > { %s2018_s25 = smov %s2013_s21 }
 0x54e   :  { %1014 = vsyncpa [#allocation5], 1 }
 0x54f   :  { %1016 = vsyncpa [#allocation5 + $0x1], 1 }
 0x550   :  { %1017 = vsyncpa [#allocation8], 1 }
 0x551   :  { %1019 = vsyncpa [#allocation8 + $0x1], 1 }
 0x552   :  { %1020 = vsyncpa [#allocation11], 1 }
 0x553   :  { %1022 = vsyncpa [#allocation11 + $0x1], 1 }
 0x554   :  { %1023 = vsyncpa [#allocation6], 1 }
 0x555   :  { %1025 = vsyncpa [#allocation6 + $0x1], 1 }
 0x556   :  { %1026 = vsyncpa [#allocation15], 1 }
 0x557   :  { %1028 = vsyncpa [#allocation15 + $0x1], 1 }

</bundles_post_ra>
